<compile_context>
chip_gen: v5e
topology: v5e:2x2
jax: 0.10.0
libtpu: 0.0.40
codegen_flags: <defaults>
</compile_context>

<pallas_src>
import jax
import jax.numpy as jnp
from jax.experimental import pallas as pl
from jax.experimental.pallas import tpu as pltpu

NODE_TYPES = ("user", "food", "ingredient", "category", "habit")


def _round_up(x, m):
    return (x + m - 1) // m * m


# --------------------------------------------------------------------------
# Fused Pallas kernel: projections + conv1 + ReLU + conv2 + log_softmax
# --------------------------------------------------------------------------

def _make_kernel(N, R, in_cols, common, hidden, classes,
                 off_init, off_w1, off_b1, off_w2, off_b2):
    def kernel(x_ref, a_ref, p_ref, o_ref):
        # (1) fused per-type input projections:
        #     block-diagonal features (+ per-type indicator columns that carry
        #     the init biases) @ stacked per-type weights (+ bias table rows).
        x_all = jnp.dot(x_ref[...],
                        p_ref[off_init:off_init + in_cols, :common],
                        preferred_element_type=jnp.float32)          # (N, common)

        a_flat = a_ref[...]                                          # (N, (R+1)*N)

        def conv(x, w_off, b_off, f_in, f_out):
            # (R+1) independent projections (last one is the root weight — the
            # identity pseudo-relation block of a_flat picks it up), stacked on
            # the sublane axis, then ONE K=(R+1)*N matmul against a_flat.
            xw = [jnp.dot(x,
                          p_ref[w_off + r * f_in: w_off + (r + 1) * f_in, :f_out],
                          preferred_element_type=jnp.float32)
                  for r in range(R + 1)]
            xw_stacked = jnp.concatenate(xw, axis=0)                 # ((R+1)*N, f_out)
            out = jnp.dot(a_flat, xw_stacked,
                          preferred_element_type=jnp.float32)
            return out + p_ref[b_off:b_off + 1, :f_out]

        # conv1 + fused ReLU epilogue
        h = jnp.maximum(conv(x_all, off_w1, off_b1, common, hidden), 0.0)
        # TODO(synk): F.dropout skipped (eval/inference path; training RNG mask not reproduced).

        # conv2
        logits = conv(h, off_w2, off_b2, hidden, classes)

        # fused numerically-stable log_softmax epilogue
        m = jnp.max(logits, axis=-1, keepdims=True)
        z = logits - m
        lse = jnp.log(jnp.sum(jnp.exp(z), axis=-1, keepdims=True))
        o_ref[...] = (z - lse).astype(o_ref.dtype)

    return kernel


# --------------------------------------------------------------------------
# Glue: parameter init, layout packing, full forward (jitted)
# --------------------------------------------------------------------------

def init_params(key, node_feature_dims, num_relations, common_dim, hidden_dim,
                num_classes):
    params = {}
    keys = jax.random.split(key, 32)
    ki = iter(range(32))

    # per-type init linears (torch nn.Linear style uniform init, deterministic)
    for t in NODE_TYPES:
        f_in = node_feature_dims[t]
        k = 1.0 / jnp.sqrt(jnp.float32(f_in))
        w = jax.random.uniform(keys[next(ki)], (f_in, common_dim), jnp.float32, -k, k)
        b = jax.random.uniform(keys[next(ki)], (common_dim,), jnp.float32, -k, k)
        params[f"init_{t}"] = (w, b)

    def conv_params(k1, k2, k3, f_in, f_out):
        s = 1.0 / jnp.sqrt(jnp.float32(f_in))
        w = jax.random.uniform(k1, (num_relations, f_in, f_out), jnp.float32, -s, s)
        root = jax.random.uniform(k2, (f_in, f_out), jnp.float32, -s, s)
        b = jax.random.uniform(k3, (f_out,), jnp.float32, -s, s)
        return w, root, b

    params["conv1"] = conv_params(keys[next(ki)], keys[next(ki)], keys[next(ki)],
                                  common_dim, hidden_dim)
    params["conv2"] = conv_params(keys[next(ki)], keys[next(ki)], keys[next(ki)],
                                  hidden_dim, num_classes)
    return params


def rgcn_forward(params, x_dict, edge_index, edge_type, num_relations):
    R = num_relations
    T = len(NODE_TYPES)
    dims = [x_dict[t].shape[1] for t in NODE_TYPES]
    counts = [x_dict[t].shape[0] for t in NODE_TYPES]
    total_f = sum(dims)
    N = sum(counts)

    common = params["init_user"][0].shape[1]
    w1, root1, b1 = params["conv1"]
    w2, root2, b2 = params["conv2"]
    hidden = w1.shape[2]
    classes = w2.shape[2]

    # ---- (a) block-diagonal features + per-type indicator columns ----------
    # (the indicator columns fold the per-type init biases into the matmul)
    in_cols = total_f + T
    rows = []
    off = 0
    for i, (t, d) in enumerate(zip(NODE_TYPES, dims)):
        x_t = x_dict[t].astype(jnp.float32)
        ind = jnp.broadcast_to(jax.nn.one_hot(i, T, dtype=jnp.float32),
                               (x_t.shape[0], T))
        rows.append(jnp.concatenate(
            [jnp.pad(x_t, ((0, 0), (off, total_f - off - d))), ind], axis=1))
        off += d
    x_aug = jnp.concatenate(rows, axis=0)                      # (N, total_f + T)

    # ---- (b) flattened relation adjacency via one-hot matmuls (no scatter) -
    # A_flat[dst, r*N + src] = 1 / in_deg_r(dst) per edge, plus identity block
    # for the root/self pseudo-relation.
    src, dst = edge_index[0], edge_index[1]
    dst_oh = jax.nn.one_hot(dst, N, dtype=jnp.float32)                      # (E, N)
    col_oh = jax.nn.one_hot(edge_type * N + src, R * N, dtype=jnp.float32)  # (E, R*N)
    cnt = jnp.dot(dst_oh.T, col_oh)                                         # (N, R*N)
    cnt3 = cnt.reshape(N, R, N)
    deg = jnp.sum(cnt3, axis=2, keepdims=True)
    a_edges = (cnt3 / jnp.maximum(deg, 1.0)).reshape(N, R * N)
    a_flat = jnp.concatenate([a_edges, jnp.eye(N, dtype=jnp.float32)],
                             axis=1)                                        # (N, (R+1)*N)

    # ---- (c) ONE packed parameter slab (8-row aligned sections) ------------
    slab_cols = max(common, hidden, classes)

    def pad_cols(a):
        return jnp.pad(a, ((0, 0), (0, slab_cols - a.shape[1])))

    w_init_aug = jnp.concatenate(
        [params[f"init_{t}"][0] for t in NODE_TYPES]
        + [jnp.stack([params[f"init_{t}"][1] for t in NODE_TYPES], axis=0)],
        axis=0)                                                   # (in_cols, common)

    w1_stack = jnp.concatenate([w1, root1[None]], axis=0)        # (R+1, common, hidden)
    w1_stack = w1_stack.reshape(-1, hidden)                      # ((R+1)*common, hidden)
    w2_stack = jnp.concatenate([w2, root2[None]], axis=0)        # (R+1, hidden, classes)
    w2_stack = pad_cols(w2_stack.reshape(-1, classes))           # ((R+1)*hidden, slab_cols)

    off_init = 0
    off_w1 = _round_up(off_init + in_cols, 8)
    off_b1 = off_w1 + (R + 1) * common
    off_w2 = _round_up(off_b1 + 1, 8)
    off_b2 = off_w2 + (R + 1) * hidden
    slab_rows = _round_up(off_b2 + 1, 8)

    slab = jnp.concatenate([
        pad_cols(w_init_aug),
        jnp.zeros((off_w1 - (off_init + in_cols), slab_cols), jnp.float32),
        pad_cols(w1_stack),
        pad_cols(b1.reshape(1, -1)),
        jnp.zeros((off_w2 - (off_b1 + 1), slab_cols), jnp.float32),
        w2_stack,
        pad_cols(b2.reshape(1, -1)),
        jnp.zeros((slab_rows - (off_b2 + 1), slab_cols), jnp.float32),
    ], axis=0)                                                    # (slab_rows, slab_cols)

    # ---- (d) single gridless pallas_call, everything resident in VMEM ------
    kernel = _make_kernel(N, R, in_cols, common, hidden, classes,
                          off_init, off_w1, off_b1, off_w2, off_b2)
    return pl.pallas_call(
        kernel,
        out_shape=jax.ShapeDtypeStruct((N, classes), jnp.float32),
        in_specs=[pl.BlockSpec(memory_space=pltpu.MemorySpace.VMEM)] * 3,
        out_specs=pl.BlockSpec(memory_space=pltpu.MemorySpace.VMEM),
    )(x_aug, a_flat, slab)


rgcn_forward_jit = jax.jit(rgcn_forward, static_argnums=(4,))


# --------------------------------------------------------------------------
# Driver
# --------------------------------------------------------------------------

if __name__ == "__main__":
    num_relations = 4
    common_dim = 32
    hidden_dim = 32
    num_classes = 8
    node_feature_dims = {"user": 12, "food": 10, "ingredient": 9,
                         "category": 6, "habit": 7}
    node_counts = {"user": 8, "food": 8, "ingredient": 8,
                   "category": 4, "habit": 4}
    num_nodes = sum(node_counts.values())     # 32
    num_edges = 64

    key = jax.random.PRNGKey(0)
    kp, kx, ke_src, ke_dst, ke_typ = jax.random.split(key, 5)

    params = init_params(kp, node_feature_dims, num_relations, common_dim,
                         hidden_dim, num_classes)

    xkeys = jax.random.split(kx, len(NODE_TYPES))
    x_dict = {t: jax.random.normal(xkeys[i],
                                   (node_counts[t], node_feature_dims[t]),
                                   jnp.float32)
              for i, t in enumerate(NODE_TYPES)}

    edge_index = jnp.stack([
        jax.random.randint(ke_src, (num_edges,), 0, num_nodes),
        jax.random.randint(ke_dst, (num_edges,), 0, num_nodes),
    ], axis=0).astype(jnp.int32)
    edge_type = jax.random.randint(ke_typ, (num_edges,), 0,
                                   num_relations).astype(jnp.int32)

    out = rgcn_forward_jit(params, x_dict, edge_index, edge_type, num_relations)
    out = jax.block_until_ready(out)
    assert out.shape == (num_nodes, num_classes)
    print("KERNEL_OK")
</pallas_src>

<mosaic_0001>
module attributes {stable_mosaic.version = 11 : i64} {
  func.func @kernel(%arg0: memref<32x49xf32, #tpu.memory_space<vmem>>, %arg1: memref<32x160xf32, #tpu.memory_space<vmem>>, %arg2: memref<392x32xf32, #tpu.memory_space<vmem>>, %arg3: memref<32x8xf32, #tpu.memory_space<vmem>>) attributes {dimension_semantics = [], scalar_prefetch = 0 : i64, scratch_operands = 0 : i64, tpu.core_type = #tpu.core_type<tc>} {
    %c0 = arith.constant 0 : index
    %c0_0 = arith.constant 0 : index
    %0 = vector.load %arg0[%c0, %c0_0] : memref<32x49xf32, #tpu.memory_space<vmem>>, vector<32x49xf32>
    %c0_1 = arith.constant 0 : index
    %c0_2 = arith.constant 0 : index
    %1 = vector.load %arg2[%c0_1, %c0_2] : memref<392x32xf32, #tpu.memory_space<vmem>>, vector<49x32xf32>
    %cst = arith.constant dense<0.000000e+00> : vector<32x32xf32>
    %2 = tpu.matmul %0, %1, %cst {dimension_numbers = #tpu.dot_dimension_numbers<[1], [0], [0], [1], [0, 0, 1, 1], [], []>} : vector<32x49xf32>, vector<49x32xf32>, vector<32x32xf32> -> vector<32x32xf32>
    %c0_3 = arith.constant 0 : index
    %c0_4 = arith.constant 0 : index
    %3 = vector.load %arg1[%c0_3, %c0_4] : memref<32x160xf32, #tpu.memory_space<vmem>>, vector<32x160xf32>
    %c56 = arith.constant 56 : index
    %c0_5 = arith.constant 0 : index
    %4 = vector.load %arg2[%c56, %c0_5] : memref<392x32xf32, #tpu.memory_space<vmem>>, vector<32x32xf32>
    %cst_6 = arith.constant dense<0.000000e+00> : vector<32x32xf32>
    %5 = tpu.matmul %2, %4, %cst_6 {dimension_numbers = #tpu.dot_dimension_numbers<[1], [0], [0], [1], [0, 0, 1, 1], [], []>} : vector<32x32xf32>, vector<32x32xf32>, vector<32x32xf32> -> vector<32x32xf32>
    %c88 = arith.constant 88 : index
    %c0_7 = arith.constant 0 : index
    %6 = vector.load %arg2[%c88, %c0_7] : memref<392x32xf32, #tpu.memory_space<vmem>>, vector<32x32xf32>
    %cst_8 = arith.constant dense<0.000000e+00> : vector<32x32xf32>
    %7 = tpu.matmul %2, %6, %cst_8 {dimension_numbers = #tpu.dot_dimension_numbers<[1], [0], [0], [1], [0, 0, 1, 1], [], []>} : vector<32x32xf32>, vector<32x32xf32>, vector<32x32xf32> -> vector<32x32xf32>
    %c120 = arith.constant 120 : index
    %c0_9 = arith.constant 0 : index
    %8 = vector.load %arg2[%c120, %c0_9] : memref<392x32xf32, #tpu.memory_space<vmem>>, vector<32x32xf32>
    %cst_10 = arith.constant dense<0.000000e+00> : vector<32x32xf32>
    %9 = tpu.matmul %2, %8, %cst_10 {dimension_numbers = #tpu.dot_dimension_numbers<[1], [0], [0], [1], [0, 0, 1, 1], [], []>} : vector<32x32xf32>, vector<32x32xf32>, vector<32x32xf32> -> vector<32x32xf32>
    %c152 = arith.constant 152 : index
    %c0_11 = arith.constant 0 : index
    %10 = vector.load %arg2[%c152, %c0_11] : memref<392x32xf32, #tpu.memory_space<vmem>>, vector<32x32xf32>
    %cst_12 = arith.constant dense<0.000000e+00> : vector<32x32xf32>
    %11 = tpu.matmul %2, %10, %cst_12 {dimension_numbers = #tpu.dot_dimension_numbers<[1], [0], [0], [1], [0, 0, 1, 1], [], []>} : vector<32x32xf32>, vector<32x32xf32>, vector<32x32xf32> -> vector<32x32xf32>
    %c184 = arith.constant 184 : index
    %c0_13 = arith.constant 0 : index
    %12 = vector.load %arg2[%c184, %c0_13] : memref<392x32xf32, #tpu.memory_space<vmem>>, vector<32x32xf32>
    %cst_14 = arith.constant dense<0.000000e+00> : vector<32x32xf32>
    %13 = tpu.matmul %2, %12, %cst_14 {dimension_numbers = #tpu.dot_dimension_numbers<[1], [0], [0], [1], [0, 0, 1, 1], [], []>} : vector<32x32xf32>, vector<32x32xf32>, vector<32x32xf32> -> vector<32x32xf32>
    %14 = tpu.concatenate %5, %7, %9, %11, %13 in 0 : vector<32x32xf32>, vector<32x32xf32>, vector<32x32xf32>, vector<32x32xf32>, vector<32x32xf32> -> vector<160x32xf32>
    %cst_15 = arith.constant dense<0.000000e+00> : vector<32x32xf32>
    %15 = tpu.matmul %3, %14, %cst_15 {dimension_numbers = #tpu.dot_dimension_numbers<[1], [0], [0], [1], [0, 0, 1, 1], [], []>} : vector<32x160xf32>, vector<160x32xf32>, vector<32x32xf32> -> vector<32x32xf32>
    %c216 = arith.constant 216 : index
    %c0_16 = arith.constant 0 : index
    %16 = vector.load %arg2[%c216, %c0_16] : memref<392x32xf32, #tpu.memory_space<vmem>>, vector<1x32xf32>
    %17 = vector.broadcast %16 : vector<1x32xf32> to vector<32x32xf32>
    %18 = arith.addf %15, %17 : vector<32x32xf32>
    %cst_17 = arith.constant 0.000000e+00 : f32
    %19 = vector.broadcast %cst_17 : f32 to vector<32x32xf32>
    %20 = arith.maximumf %18, %19 : vector<32x32xf32>
    %c224 = arith.constant 224 : index
    %c0_18 = arith.constant 0 : index
    %21 = vector.load %arg2[%c224, %c0_18] : memref<392x32xf32, #tpu.memory_space<vmem>>, vector<32x8xf32>
    %cst_19 = arith.constant dense<0.000000e+00> : vector<32x8xf32>
    %22 = tpu.matmul %20, %21, %cst_19 {dimension_numbers = #tpu.dot_dimension_numbers<[1], [0], [0], [1], [0, 0, 1, 1], [], []>} : vector<32x32xf32>, vector<32x8xf32>, vector<32x8xf32> -> vector<32x8xf32>
    %c256 = arith.constant 256 : index
    %c0_20 = arith.constant 0 : index
    %23 = vector.load %arg2[%c256, %c0_20] : memref<392x32xf32, #tpu.memory_space<vmem>>, vector<32x8xf32>
    %cst_21 = arith.constant dense<0.000000e+00> : vector<32x8xf32>
    %24 = tpu.matmul %20, %23, %cst_21 {dimension_numbers = #tpu.dot_dimension_numbers<[1], [0], [0], [1], [0, 0, 1, 1], [], []>} : vector<32x32xf32>, vector<32x8xf32>, vector<32x8xf32> -> vector<32x8xf32>
    %c288 = arith.constant 288 : index
    %c0_22 = arith.constant 0 : index
    %25 = vector.load %arg2[%c288, %c0_22] : memref<392x32xf32, #tpu.memory_space<vmem>>, vector<32x8xf32>
    %cst_23 = arith.constant dense<0.000000e+00> : vector<32x8xf32>
    %26 = tpu.matmul %20, %25, %cst_23 {dimension_numbers = #tpu.dot_dimension_numbers<[1], [0], [0], [1], [0, 0, 1, 1], [], []>} : vector<32x32xf32>, vector<32x8xf32>, vector<32x8xf32> -> vector<32x8xf32>
    %c320 = arith.constant 320 : index
    %c0_24 = arith.constant 0 : index
    %27 = vector.load %arg2[%c320, %c0_24] : memref<392x32xf32, #tpu.memory_space<vmem>>, vector<32x8xf32>
    %cst_25 = arith.constant dense<0.000000e+00> : vector<32x8xf32>
    %28 = tpu.matmul %20, %27, %cst_25 {dimension_numbers = #tpu.dot_dimension_numbers<[1], [0], [0], [1], [0, 0, 1, 1], [], []>} : vector<32x32xf32>, vector<32x8xf32>, vector<32x8xf32> -> vector<32x8xf32>
    %c352 = arith.constant 352 : index
    %c0_26 = arith.constant 0 : index
    %29 = vector.load %arg2[%c352, %c0_26] : memref<392x32xf32, #tpu.memory_space<vmem>>, vector<32x8xf32>
    %cst_27 = arith.constant dense<0.000000e+00> : vector<32x8xf32>
    %30 = tpu.matmul %20, %29, %cst_27 {dimension_numbers = #tpu.dot_dimension_numbers<[1], [0], [0], [1], [0, 0, 1, 1], [], []>} : vector<32x32xf32>, vector<32x8xf32>, vector<32x8xf32> -> vector<32x8xf32>
    %31 = tpu.concatenate %22, %24, %26, %28, %30 in 0 : vector<32x8xf32>, vector<32x8xf32>, vector<32x8xf32>, vector<32x8xf32>, vector<32x8xf32> -> vector<160x8xf32>
    %cst_28 = arith.constant dense<0.000000e+00> : vector<32x8xf32>
    %32 = tpu.matmul %3, %31, %cst_28 {dimension_numbers = #tpu.dot_dimension_numbers<[1], [0], [0], [1], [0, 0, 1, 1], [], []>} : vector<32x160xf32>, vector<160x8xf32>, vector<32x8xf32> -> vector<32x8xf32>
    %c384 = arith.constant 384 : index
    %c0_29 = arith.constant 0 : index
    %33 = vector.load %arg2[%c384, %c0_29] : memref<392x32xf32, #tpu.memory_space<vmem>>, vector<1x8xf32>
    %34 = vector.broadcast %33 : vector<1x8xf32> to vector<32x8xf32>
    %35 = arith.addf %32, %34 : vector<32x8xf32>
    %cst_30 = arith.constant dense<0xFF800000> : vector<32xf32>
    %36 = vector.multi_reduction <maximumf>, %35, %cst_30 [1] : vector<32x8xf32> to vector<32xf32>
    %37 = vector.shape_cast %36 : vector<32xf32> to vector<32x1xf32>
    %38 = vector.broadcast %37 : vector<32x1xf32> to vector<32x8xf32>
    %39 = arith.subf %35, %38 : vector<32x8xf32>
    %40 = math.exp %39 : vector<32x8xf32>
    %cst_31 = arith.constant dense<0.000000e+00> : vector<32xf32>
    %41 = vector.multi_reduction <add>, %40, %cst_31 [1] : vector<32x8xf32> to vector<32xf32>
    %42 = vector.shape_cast %41 : vector<32xf32> to vector<32x1xf32>
    %43 = math.log %42 : vector<32x1xf32>
    %44 = vector.broadcast %43 : vector<32x1xf32> to vector<32x8xf32>
    %45 = arith.subf %39, %44 : vector<32x8xf32>
    %c0_32 = arith.constant 0 : index
    %c0_33 = arith.constant 0 : index
    %46 = vector.load %arg3[%c0_32, %c0_33] : memref<32x8xf32, #tpu.memory_space<vmem>>, vector<32x8xf32>
    tpu.vector_store %arg3[%c0_32, %c0_33], %45 {strides = array<i32>} : memref<32x8xf32, #tpu.memory_space<vmem>>, vector<32x8xf32>,
    return
  }
}

</mosaic_0001>

<bundles_post_ra>
// kernel: div.0
= control target key start
LH: loop header
LB: loop body
LE: loop exit
PB: predicated region body
PF: predicated region fallthrough
CT: control target
= control target key end

     0   :  { %s193_s0 = inlined_call_operand.vmem [shape: f32[32,128], index: 0, kind: input, shape index: {}]   ;;  %s194_s1 = inlined_call_operand.vmem [shape: f32[32,128], index: 1, kind: input, shape index: {}]   ;;  %s195_s2 = inlined_call_operand.vmem [shape: f32[32,128], index: 2, kind: output, shape index: {}]  }
   0x1   :  { %v4_v0 = vld [vmem:[%s194_s1] sm:$0xff]  ;;  %v97_v1 = vld [vmem:[%s194_s1 + $0x8] sm:$0xff]  ;;  %v100_v2 = vld [vmem:[%s194_s1 + $0x10] sm:$0xff] }
   0x2   :  { %105 = vrcp.f32 %v4_v0  ;;  %v103_v3 = vld [vmem:[%s194_s1 + $0x18] sm:$0xff]  ;;  %v16_v4 = vand.u32 2147483647, %v4_v0  ;;  %v18_v5 = vand.u32 2147483648, %v4_v0  ;;  %v41_v6 = vand.u32 2147483648, %v97_v1  ;;  %v3_v33 = vld [vmem:[%s193_s0] sm:$0xff] }
   0x3   :  { %107 = vrcp.f32 %v97_v1  ;;  %vm12_vm0 = vweird.f32 %v4_v0  ;;  %vm35_vm1 = vweird.f32 %v97_v1  ;;  %v39_v10 = vand.u32 2147483647, %v97_v1  ;;  %v96_v38 = vld [vmem:[%s193_s0 + $0x8] sm:$0xff]  ;;  %v99_v43 = vld [vmem:[%s193_s0 + $0x10] sm:$0xff]  ;;  %v102_v51 = vld [vmem:[%s193_s0 + $0x18] sm:$0xff] }
   0x4   :  { %109 = vrcp.f32 %v100_v2  ;;  %vm140_vm2 = vcmp.eq.f32.partialorder %v16_v4, 8.507059e+37  ;;  %v19_v13 = vor.u32 1.1754944e-38, %v18_v5  ;;  %vm59_vm3 = vweird.f32 %v100_v2 }
   0x5   :  { %111 = vrcp.f32 %v103_v3  ;;  %v42_v16 = vor.u32 1.1754944e-38, %v41_v6  ;;  %v63_v20 = vand.u32 2147483647, %v100_v2  ;;  %v65_v21 = vand.u32 2147483648, %v100_v2 }
   0x6   :  { %vm83_vm8 = vweird.f32 %v103_v3  ;;  %v87_v27 = vand.u32 2147483647, %v103_v3  ;;  %v89_v28 = vand.u32 2147483648, %v103_v3  ;;  %vm40_vm11 = vcmp.eq.f32.partialorder %v39_v10, 8.507059e+37 }
   0x7   :  { %v66_v36 = vor.u32 1.1754944e-38, %v65_v21  ;;  %vm64_vm13 = vcmp.eq.f32.partialorder %v63_v20, 8.507059e+37 }
   0x8   :  { %v106_v7 = vpop.eup %105  ;;  %vm88_vm15 = vcmp.eq.f32.partialorder %v87_v27, 8.507059e+37  ;;  %v90_v44 = vor.u32 1.1754944e-38, %v89_v28 }
   0x9   :  { %v108_v8 = vpop.eup %107  ;;  %v8_v9 = vmul.f32 %v106_v7, %v4_v0  ;;  %vm13_vm4 = vweird.f32 %v106_v7 }
   0xa   :  { %v110_v11 = vpop.eup %109  ;;  %v31_v14 = vmul.f32 %v108_v8, %v97_v1  ;;  %vm36_vm5 = vweird.f32 %v108_v8  ;;  %vm145_vm7 = vmor %vm12_vm0, %vm13_vm4 }
   0xb   :  { %v9_v15 = vsub.f32 1.0, %v8_v9  ;;  %v55_v17 = vmul.f32 %v110_v11, %v100_v2  ;;  %v112_v18 = vpop.eup %111  ;;  %vm60_vm6 = vweird.f32 %v110_v11  ;;  %vm150_vm9 = vmor %vm35_vm1, %vm36_vm5 }
   0xc   :  { %v32_v19 = vsub.f32 1.0, %v31_v14  ;;  %v79_v24 = vmul.f32 %v112_v18, %v103_v3  ;;  %vm84_vm10 = vweird.f32 %v112_v18  ;;  %vm159_vm12 = vmor %vm59_vm3, %vm60_vm6 }
   0xd   :  { %v10_v22 = vmul.f32 %v106_v7, %v9_v15  ;;  %v56_v23 = vsub.f32 1.0, %v55_v17  ;;  %vm85_vm14 = vmor %vm83_vm8, %vm84_vm10 }
   0xe   :  { %v33_v26 = vmul.f32 %v108_v8, %v32_v19  ;;  %v80_v32 = vsub.f32 1.0, %v79_v24 }
   0xf   :  { %v11_v29 = vadd.f32 %v106_v7, %v10_v22  ;;  %v57_v31 = vmul.f32 %v110_v11, %v56_v23 }
  0x10   :  { %v34_v34 = vadd.f32 %v108_v8, %v33_v26  ;;  %v81_v40 = vmul.f32 %v112_v18, %v80_v32 }
  0x11   :  { %v15_v37 = vsel %vm145_vm7, %v106_v7, %v11_v29  ;;  %v58_v39 = vadd.f32 %v110_v11, %v57_v31 }
  0x12   :  { %v20_v41 = vsel %vm140_vm2, %v19_v13, %v15_v37  ;;  %v38_v42 = vsel %vm150_vm9, %v108_v8, %v34_v34  ;;  %v82_v48 = vadd.f32 %v112_v18, %v81_v40 }
  0x13   :  { %v21_v45 = vmul.f32 %v20_v41, %v3_v33  ;;  %v43_v46 = vsel %vm40_vm11, %v42_v16, %v38_v42  ;;  %v62_v47 = vsel %vm159_vm12, %v110_v11, %v58_v39 }
  0x14   :  { %v44_v49 = vmul.f32 %v96_v38, %v43_v46  ;;  %v67_v50 = vsel %vm64_vm13, %v66_v36, %v62_v47  ;;  %v86_v53 = vsel %vm85_vm14, %v112_v18, %v82_v48 }
  0x15   :  { %23 = vst [vmem:[%s195_s2] sm:$0xff] %v21_v45  ;;  %v68_v52 = vmul.f32 %v99_v43, %v67_v50  ;;  %v91_v54 = vsel %vm88_vm15, %v90_v44, %v86_v53 }
  0x16   :  { %98 = vst [vmem:[%s195_s2 + $0x8] sm:$0xff] %v44_v49  ;;  %v92_v55 = vmul.f32 %v102_v51, %v91_v54 }
  0x17   :  { %101 = vst [vmem:[%s195_s2 + $0x10] sm:$0xff] %v68_v52 }
  0x18   :  { %104 = vst [vmem:[%s195_s2 + $0x18] sm:$0xff] %v92_v55 }

// kernel: rgcn_forward.1
= control target key start
LH: loop header
LB: loop body
LE: loop exit
PB: predicated region body
PF: predicated region fallthrough
CT: control target
= control target key end

     0   :  { %vm38_vm0 = vcmask 1040384   ;;  %vm25_vm1 = vcmask 400384   ;;  %vm83_vm2 = vcmask 261120   ;;  %vm570_vm3 = vcmask 64512   ;;  %s1009_s2 = inlined_call_operand.vmem [shape: f32[392,32], index: 2, kind: input, shape index: {}]   ;;  %s1010_s0 = inlined_call_operand.vmem [shape: f32[32,49], index: 0, kind: input, shape index: {}]   ;;  %s1011_s1 = inlined_call_operand.vmem [shape: f32[32,160], index: 1, kind: input, shape index: {}]   ;;  %s1012_s3 = inlined_call_operand.vmem [shape: f32[32,8], index: 3, kind: output, shape index: {}]  }
   0x1   :  { %v24_v0 = vld [vmem:[%s1009_s2 + $0x30] sm:$0x1]  ;;  %v23_v1 = vld [vmem:[%s1009_s2 + $0x28] sm:$0xff]  ;;  %v22_v2 = vld [vmem:[%s1009_s2 + $0x20] sm:$0xff] }
   0x2   :  { %627 = vmatpush.msk.msra.mxu0 %vm38_vm0, %v24_v0  ;;  %v21_v3 = vld [vmem:[%s1009_s2 + $0x18] sm:$0xff]  ;;  %v20_v4 = vld [vmem:[%s1009_s2 + $0x10] sm:$0xff]  ;;  %v127_v8 = vld [vmem:[%s1009_s2 + $0x68] sm:$0xff] }
   0x3   :  { %v128_v5 = vld [vmem:[%s1009_s2 + $0x70] sm:$0xff]  ;;  %v160_v9 = vld [vmem:[%s1009_s2 + $0x88] sm:$0xff]  ;;  %v126_v11 = vld [vmem:[%s1009_s2 + $0x60] sm:$0xff] }
   0x4   :  { %52 = vmatpush.msra.mxu0 %v23_v1  ;;  %v161_v6 = vld [vmem:[%s1009_s2 + $0x90] sm:$0xff]  ;;  %141 = vmatpush.msra.mxu2 %v128_v5  ;;  %v19_v10 = vld [vmem:[%s1009_s2 + $0x8] sm:$0xff]  ;;  %v159_v13 = vld [vmem:[%s1009_s2 + $0x80] sm:$0xff] }
   0x5   :  { %v82_v7 = vld [vmem:[%s1009_s2 + $0x50] sm:$0xff]  ;;  %174 = vmatpush.msra.mxu3 %v161_v6  ;;  %v81_v12 = vld [vmem:[%s1009_s2 + $0x48] sm:$0xff]  ;;  %v18_v14 = vld [vmem:[%s1009_s2] sm:$0xff] }
   0x6   :  { %53 = vmatpush.msra.mxu0 %v22_v2  ;;  %680 = vmatpush.msra.mxu1 %v82_v7  ;;  %v14_v15 = vld [vmem:[%s1010_s0] sm:$0xff]  ;;  %v15_v17 = vld [vmem:[%s1010_s0 + $0x8] sm:$0xff]  ;;  %v16_v18 = vld [vmem:[%s1010_s0 + $0x10] sm:$0xff] }
   0x7   :  { %142 = vmatpush.msra.mxu2 %v127_v8  ;;  %175 = vmatpush.msra.mxu3 %v160_v9  ;;  %v80_v16 = vld [vmem:[%s1009_s2 + $0x40] sm:$0xff]  ;;  %v17_v19 = vld [vmem:[%s1010_s0 + $0x18] sm:$0xff]  ;;  %v194_v23 = vld [vmem:[%s1009_s2 + $0xb0] sm:$0xff] }
   0x8   :  { %54 = vmatpush.msra.mxu0 %v21_v3  ;;  %681 = vmatpush.msra.mxu1 %v81_v12  ;;  %v79_v20 = vld [vmem:[%s1009_s2 + $0x38] sm:$0xff]  ;;  %v227_v24 = vld [vmem:[%s1009_s2 + $0xd0] sm:$0xff]  ;;  %v193_v25 = vld [vmem:[%s1009_s2 + $0xa8] sm:$0xff] }
   0x9   :  { %143 = vmatpush.msra.mxu2 %v126_v11  ;;  %176 = vmatpush.msra.mxu3 %v159_v13  ;;  %v125_v21 = vld [vmem:[%s1009_s2 + $0x58] sm:$0xff]  ;;  %v226_v26 = vld [vmem:[%s1009_s2 + $0xc8] sm:$0xff]  ;;  %v192_v27 = vld [vmem:[%s1009_s2 + $0xa0] sm:$0xff] }
   0xa   :  { %55 = vmatpush.msra.mxu0 %v20_v4  ;;  %682 = vmatpush.msra.mxu1 %v80_v16  ;;  %v158_v22 = vld [vmem:[%s1009_s2 + $0x78] sm:$0xff]  ;;  %v225_v28 = vld [vmem:[%s1009_s2 + $0xc0] sm:$0xff]  ;;  %v838_v53 = vld [vmem:[%s1011_s1 + $0x8] sm:$0xff] }
   0xb   :  { %144 = vmatpush.msra.mxu2 %v125_v21  ;;  %177 = vmatpush.msra.mxu3 %v158_v22  ;;  %v191_v29 = vld [vmem:[%s1009_s2 + $0x98] sm:$0xff]  ;;  %v852_v57 = vld [vmem:[%s1011_s1 + $0x28] sm:$0xff]  ;;  %v857_v58 = vld [vmem:[%s1011_s1] sm:$0xff] }
   0xc   :  { %56 = vmatpush.msra.mxu0 %v19_v10  ;;  %683 = vmatpush.msra.mxu1 %v79_v20  ;;  %v224_v31 = vld [vmem:[%s1009_s2 + $0xb8] sm:$0xff]  ;;  %v870_v60 = vld [vmem:[%s1011_s1 + $0x10] sm:$0xff]  ;;  %v878_v61 = vld [vmem:[%s1011_s1 + $0x20] sm:$0xff] }
   0xd   :  { %240 = vmatpush.msrb.mxu2 %v227_v24  ;;  %v845_v55 = vld [vmem:[%s1011_s1 + $0x18] sm:$0xff]  ;;  %v884_v62 = vld [vmem:[%s1011_s1 + $0x30] sm:$0xff]  ;;  %v379_v8 = vld [vmem:[%s1009_s2 + $0x108] sm:$0xff] }
   0xe   :  { %57 = vmatpush.msra.mxu0 %v18_v14  ;;  %207 = vmatpush.msrb.mxu1 %v194_v23  ;;  %v865_v59 = vld [vmem:[%s1011_s1 + $0x38] sm:$0xff]  ;;  %v335_v3 = vld [vmem:[%s1009_s2 + $0xf0] sm:$0xff]  ;;  %v412_v9 = vld [vmem:[%s1009_s2 + $0x128] sm:$0xff] }
   0xf   :  { %628 = vmatmul.msk.f32.vlgmr.msra.gmra.mxu0 %vm25_vm1, %v14_v15  ;;  %241 = vmatpush.msrb.mxu2 %v226_v26  ;;  %v336_v63 = vld [vmem:[%s1009_s2 + $0xf8] sm:$0xff]  ;;  %v380_v4 = vld [vmem:[%s1009_s2 + $0x110] sm:$0xff]  ;;  %v445_v10 = vld [vmem:[%s1009_s2 + $0x148] sm:$0xff] }
  0x10   :  { %108 = vmatpush.msrb.mxu0 %v82_v7  ;;  %208 = vmatpush.msrb.mxu1 %v193_v25  ;;  %v381_v0 = vld [vmem:[%s1009_s2 + $0x118] sm:$0xff]  ;;  %v413_v5 = vld [vmem:[%s1009_s2 + $0x130] sm:$0xff]  ;;  %v334_v7 = vld [vmem:[%s1009_s2 + $0xe8] sm:$0xff] }
  0x11   :  { %242 = vmatpush.msrb.mxu2 %v225_v28  ;;  %v414_v1 = vld [vmem:[%s1009_s2 + $0x138] sm:$0xff]  ;;  %v446_v6 = vld [vmem:[%s1009_s2 + $0x150] sm:$0xff]  ;;  %v333_v11 = vld [vmem:[%s1009_s2 + $0xe0] sm:$0xff] }
  0x12   :  { %109 = vmatpush.msrb.mxu0 %v81_v12  ;;  %209 = vmatpush.msrb.mxu1 %v192_v27  ;;  %v447_v2 = vld [vmem:[%s1009_s2 + $0x158] sm:$0xff]  ;;  %v378_v12 = vld [vmem:[%s1009_s2 + $0x100] sm:$0xff]  ;;  %v478_v21 = vld [vmem:[%s1009_s2 + $0x168] sm:$0xff] }
  0x13   :  { %243 = vmatpush.msrb.mxu2 %v224_v31  ;;  %v411_v13 = vld [vmem:[%s1009_s2 + $0x120] sm:$0xff] }
  0x14   :  { %110 = vmatpush.msrb.mxu0 %v80_v16  ;;  %210 = vmatpush.msrb.mxu1 %v191_v29  ;;  %v444_v14 = vld [vmem:[%s1009_s2 + $0x140] sm:$0xff]  ;;  %v684_v16 = vld [vmem:[%s1009_s2 + $0xd8] ss:$0 sm:$0xff] }
  0x15   :  { %v477_v25 = vld [vmem:[%s1009_s2 + $0x160] sm:$0xff] }
  0x16   :  { %111 = vmatpush.msrb.mxu0 %v79_v20 }
  0x17   :  { %629 = vmatmul.msk.f32.gmra.mxu0 %vm25_vm1, %v15_v17 }
  0x1f   :  { %630 = vmatmul.msk.f32.gmra.mxu0 %vm25_vm1, %v16_v18  ;;  %v480_v18 = vld [vmem:[%s1009_s2 + $0x178] sm:$0xff] }
  0x27   :  { %631 = vmatmul.msk.f32.gmra.mxu0 %vm25_vm1, %v17_v19  ;;  %v479_v19 = vld [vmem:[%s1009_s2 + $0x170] sm:$0xff] }
  0x8c   :  { %v59_v30 = vpop.f32.mrf.mxu0 }
  0x8d   :  { %632 = vmatmul.msk.f32.vlgmr.msrb.gmra.mxu0 %vm83_vm2, %v59_v30  ;;  %636 = vmatmul.msk.f32.vlgmr.msra.gmra.mxu2 %vm83_vm2, %v59_v30 }
  0x8e   :  { %640 = vmatmul.msk.f32.vlgmr.msra.gmra.mxu3 %vm83_vm2, %v59_v30  ;;  %394 = vmatpush.msra.mxu2 %v381_v0 }
  0x90   :  { %395 = vmatpush.msra.mxu2 %v380_v4 }
  0x92   :  { %396 = vmatpush.msra.mxu2 %v379_v8 }
  0x94   :  { %v62_v32 = vpop.f32.mrf.mxu0  ;;  %397 = vmatpush.msra.mxu2 %v378_v12 }
  0x95   :  { %633 = vmatmul.msk.f32.gmra.mxu0 %vm83_vm2, %v62_v32  ;;  %637 = vmatmul.msk.f32.gmra.mxu2 %vm83_vm2, %v62_v32 }
  0x96   :  { %641 = vmatmul.msk.f32.gmra.mxu3 %vm83_vm2, %v62_v32 }
  0x9c   :  { %v65_v33 = vpop.f32.mrf.mxu0 }
  0x9d   :  { %634 = vmatmul.msk.f32.gmra.mxu0 %vm83_vm2, %v65_v33  ;;  %638 = vmatmul.msk.f32.gmra.mxu2 %vm83_vm2, %v65_v33 }
  0x9e   :  { %642 = vmatmul.msk.f32.gmra.mxu3 %vm83_vm2, %v65_v33 }
  0xa4   :  { %v68_v34 = vpop.f32.mrf.mxu0 }
  0xa5   :  { %635 = vmatmul.msk.f32.vlgmr.msra.gmra.mxu1 %vm83_vm2, %v68_v34  ;;  %639 = vmatmul.msk.f32.gmra.mxu2 %vm83_vm2, %v68_v34 }
  0xa6   :  { %643 = vmatmul.msk.f32.gmra.mxu3 %vm83_vm2, %v68_v34  ;;  %361 = vmatpush.msra.mxu1 %v336_v63 }
  0xa8   :  { %362 = vmatpush.msra.mxu1 %v335_v3 }
  0xaa   :  { %363 = vmatpush.msra.mxu1 %v334_v7 }
  0xac   :  { %364 = vmatpush.msra.mxu1 %v333_v11 }
  0xad   :  { %644 = vmatmul.msk.f32.vlgmr.msrb.gmra.mxu1 %vm83_vm2, %v59_v30  ;;  %648 = vmatmul.msk.f32.vlgmr.msrb.gmra.mxu2 %vm83_vm2, %v59_v30 }
  0xae   :  { %493 = vmatpush.msrb.mxu1 %v480_v18 }
  0xb0   :  { %494 = vmatpush.msrb.mxu1 %v479_v19 }
  0xb2   :  { %495 = vmatpush.msrb.mxu1 %v478_v21 }
  0xb4   :  { %496 = vmatpush.msrb.mxu1 %v477_v25 }
  0xb5   :  { %645 = vmatmul.msk.f32.gmra.mxu1 %vm83_vm2, %v62_v32  ;;  %649 = vmatmul.msk.f32.gmra.mxu2 %vm83_vm2, %v62_v32 }
  0xbd   :  { %646 = vmatmul.msk.f32.gmra.mxu1 %vm83_vm2, %v65_v33  ;;  %650 = vmatmul.msk.f32.gmra.mxu2 %vm83_vm2, %v65_v33 }
  0xc5   :  { %647 = vmatmul.msk.f32.gmra.mxu1 %vm83_vm2, %v68_v34  ;;  %651 = vmatmul.msk.f32.gmra.mxu2 %vm83_vm2, %v68_v34 }
 0x10a   :  { %v113_v50 = vpop.f32.mrf.mxu0 }
 0x110   :  { %v146_v35 = vpop.f32.mrf.mxu2 }
 0x111   :  { %v179_v41 = vpop.f32.mrf.mxu3 }
 0x112   :  { %v116_v54 = vpop.f32.mrf.mxu0 }
 0x118   :  { %v149_v36 = vpop.f32.mrf.mxu2 }
 0x119   :  { %v182_v44 = vpop.f32.mrf.mxu3 }
 0x11a   :  { %v119_v56 = vpop.f32.mrf.mxu0 }
 0x120   :  { %v152_v37 = vpop.f32.mrf.mxu2 }
 0x121   :  { %v185_v47 = vpop.f32.mrf.mxu3 }
 0x122   :  { %v122_v38 = vpop.f32.mrf.mxu1 }
 0x128   :  { %v155_v39 = vpop.f32.mrf.mxu2 }
 0x129   :  { %v188_v52 = vpop.f32.mrf.mxu3 }
 0x12a   :  { %v212_v40 = vpop.f32.mrf.mxu1 }
 0x130   :  { %v245_v42 = vpop.f32.mrf.mxu2 }
 0x132   :  { %v215_v43 = vpop.f32.mrf.mxu1 }
 0x138   :  { %v248_v45 = vpop.f32.mrf.mxu2 }
 0x13a   :  { %v218_v46 = vpop.f32.mrf.mxu1 }
 0x140   :  { %v251_v48 = vpop.f32.mrf.mxu2 }
 0x142   :  { %v221_v49 = vpop.f32.mrf.mxu1 }
 0x143   :  { %271 = vmatpush.msrb.mxu3 %v221_v49 }
 0x145   :  { %272 = vmatpush.msrb.mxu3 %v218_v46 }
 0x147   :  { %273 = vmatpush.msrb.mxu3 %v215_v43 }
 0x148   :  { %v254_v51 = vpop.f32.mrf.mxu2 }
 0x149   :  { %274 = vmatpush.msrb.mxu3 %v212_v40  ;;  %312 = vmatpush.msra.mxu0 %v254_v51 }
 0x14b   :  { %275 = vmatpush.msrb.mxu3 %v188_v52  ;;  %313 = vmatpush.msra.mxu0 %v251_v48 }
 0x14d   :  { %276 = vmatpush.msrb.mxu3 %v185_v47  ;;  %314 = vmatpush.msra.mxu0 %v248_v45 }
 0x14f   :  { %277 = vmatpush.msrb.mxu3 %v182_v44  ;;  %315 = vmatpush.msra.mxu0 %v245_v42 }
 0x150   :  { %652 = vmatmul.msk.f32.vlgmr.msra.gmra.mxu0 %vm83_vm2, %v838_v53 }
 0x151   :  { %278 = vmatpush.msrb.mxu3 %v179_v41  ;;  %460 = vmatpush.msrb.mxu0 %v447_v2 }
 0x153   :  { %279 = vmatpush.msrb.mxu3 %v155_v39  ;;  %461 = vmatpush.msrb.mxu0 %v446_v6 }
 0x155   :  { %280 = vmatpush.msrb.mxu3 %v152_v37  ;;  %462 = vmatpush.msrb.mxu0 %v445_v10 }
 0x157   :  { %281 = vmatpush.msrb.mxu3 %v149_v36  ;;  %463 = vmatpush.msrb.mxu0 %v444_v14 }
 0x158   :  { %653 = vmatmul.msk.f32.gmra.mxu0 %vm83_vm2, %v845_v55 }
 0x159   :  { %282 = vmatpush.msrb.mxu3 %v146_v35 }
 0x15b   :  { %283 = vmatpush.msrb.mxu3 %v122_v38 }
 0x15d   :  { %284 = vmatpush.msrb.mxu3 %v119_v56 }
 0x15f   :  { %285 = vmatpush.msrb.mxu3 %v116_v54 }
 0x160   :  { %654 = vmatmul.msk.f32.gmra.mxu0 %vm83_vm2, %v852_v57 }
 0x161   :  { %286 = vmatpush.msrb.mxu3 %v113_v50 }
 0x162   :  { %287 = vmatmul.f32.vlgmr.msrb.gmra.mxu3 %v857_v58 }
 0x163   :  { %427 = vmatpush.msra.mxu3 %v414_v1 }
 0x165   :  { %428 = vmatpush.msra.mxu3 %v413_v5 }
 0x167   :  { %429 = vmatpush.msra.mxu3 %v412_v9 }
 0x168   :  { %655 = vmatmul.msk.f32.gmra.mxu0 %vm83_vm2, %v865_v59 }
 0x169   :  { %430 = vmatpush.msra.mxu3 %v411_v13 }
 0x16a   :  { %290 = vmatmul.f32.gmra.mxu3 %v870_v60 }
 0x172   :  { %293 = vmatmul.f32.gmra.mxu3 %v878_v61 }
 0x17a   :  { %296 = vmatmul.f32.gmra.mxu3 %v884_v62 }
 0x1cd   :  { %v317_v15 = vpop.f32.mrf.mxu0 }
 0x1d5   :  { %v320_v23 = vpop.f32.mrf.mxu0 }
 0x1dd   :  { %v323_v30 = vpop.f32.mrf.mxu0 }
 0x1e5   :  { %v288_v17 = vpop.f32.mrf.mxu3  ;;  %v326_v36 = vpop.f32.mrf.mxu0 }
 0x1e6   :  { %v289_v20 = vadd.f32 %v684_v16, %v288_v17 }
 0x1e8   :  { %v318_v22 = vadd.f32 %v317_v15, %v289_v20 }
 0x1ea   :  { %v329_v24 = vmax.f32 %v318_v22, 0.0 }
 0x1ec   :  { %656 = vmatmul.msk.f32.vlgmr.msra.gmra.mxu1 %vm83_vm2, %v329_v24  ;;  %660 = vmatmul.msk.f32.vlgmr.msra.gmra.mxu2 %vm83_vm2, %v329_v24 }
 0x1ed   :  { %664 = vmatmul.msk.f32.vlgmr.msra.gmra.mxu3 %vm83_vm2, %v329_v24  ;;  %668 = vmatmul.msk.f32.vlgmr.msrb.gmra.mxu0 %vm83_vm2, %v329_v24  ;;  %v291_v26 = vpop.f32.mrf.mxu3 }
 0x1ee   :  { %v292_v27 = vadd.f32 %v684_v16, %v291_v26 }
 0x1f0   :  { %v321_v28 = vadd.f32 %v320_v23, %v292_v27 }
 0x1f2   :  { %v330_v29 = vmax.f32 %v321_v28, 0.0 }
 0x1f4   :  { %657 = vmatmul.msk.f32.gmra.mxu1 %vm83_vm2, %v330_v29  ;;  %661 = vmatmul.msk.f32.gmra.mxu2 %vm83_vm2, %v330_v29 }
 0x1f5   :  { %665 = vmatmul.msk.f32.gmra.mxu3 %vm83_vm2, %v330_v29  ;;  %669 = vmatmul.msk.f32.gmra.mxu0 %vm83_vm2, %v330_v29  ;;  %v294_v31 = vpop.f32.mrf.mxu3 }
 0x1f6   :  { %v295_v32 = vadd.f32 %v684_v16, %v294_v31 }
 0x1f8   :  { %v324_v33 = vadd.f32 %v323_v30, %v295_v32 }
 0x1fa   :  { %v331_v34 = vmax.f32 %v324_v33, 0.0 }
 0x1fc   :  { %658 = vmatmul.msk.f32.gmra.mxu1 %vm83_vm2, %v331_v34  ;;  %662 = vmatmul.msk.f32.gmra.mxu2 %vm83_vm2, %v331_v34 }
 0x1fd   :  { %666 = vmatmul.msk.f32.gmra.mxu3 %vm83_vm2, %v331_v34  ;;  %670 = vmatmul.msk.f32.gmra.mxu0 %vm83_vm2, %v331_v34  ;;  %v297_v35 = vpop.f32.mrf.mxu3 }
 0x1fe   :  { %v298_v37 = vadd.f32 %v684_v16, %v297_v35 }
 0x200   :  { %v327_v38 = vadd.f32 %v326_v36, %v298_v37 }
 0x202   :  { %v332_v39 = vmax.f32 %v327_v38, 0.0 }
 0x204   :  { %659 = vmatmul.msk.f32.gmra.mxu1 %vm83_vm2, %v332_v39  ;;  %663 = vmatmul.msk.f32.gmra.mxu2 %vm83_vm2, %v332_v39 }
 0x205   :  { %667 = vmatmul.msk.f32.gmra.mxu3 %vm83_vm2, %v332_v39  ;;  %671 = vmatmul.msk.f32.gmra.mxu0 %vm83_vm2, %v332_v39 }
 0x20c   :  { %672 = vmatmul.msk.f32.vlgmr.msrb.gmra.mxu1 %vm83_vm2, %v329_v24 }
 0x214   :  { %673 = vmatmul.msk.f32.gmra.mxu1 %vm83_vm2, %v330_v29 }
 0x21c   :  { %674 = vmatmul.msk.f32.gmra.mxu1 %vm83_vm2, %v331_v34 }
 0x224   :  { %675 = vmatmul.msk.f32.gmra.mxu1 %vm83_vm2, %v332_v39 }
 0x269   :  { %v366_v40 = vpop.f32.mrf.mxu1 }
 0x26a   :  { %v465_v41 = vpop.f32.mrf.mxu0 }
 0x26f   :  { %v399_v45 = vpop.f32.mrf.mxu2 }
 0x270   :  { %v432_v42 = vpop.f32.mrf.mxu3 }
 0x271   :  { %v369_v43 = vpop.f32.mrf.mxu1 }
 0x272   :  { %v468_v44 = vpop.f32.mrf.mxu0 }
 0x277   :  { %v402_v49 = vpop.f32.mrf.mxu2 }
 0x278   :  { %v435_v46 = vpop.f32.mrf.mxu3 }
 0x279   :  { %v372_v47 = vpop.f32.mrf.mxu1 }
 0x27a   :  { %v471_v48 = vpop.f32.mrf.mxu0 }
 0x27f   :  { %v405_v54 = vpop.f32.mrf.mxu2 }
 0x280   :  { %v438_v50 = vpop.f32.mrf.mxu3 }
 0x281   :  { %v375_v51 = vpop.f32.mrf.mxu1 }
 0x282   :  { %v474_v52 = vpop.f32.mrf.mxu0 }
 0x283   :  { %512 = vmatpush.msrb.mxu2 %v474_v52 }
 0x285   :  { %513 = vmatpush.msrb.mxu2 %v471_v48 }
 0x287   :  { %514 = vmatpush.msrb.mxu2 %v468_v44  ;;  %v408_v1 = vpop.f32.mrf.mxu2 }
 0x288   :  { %v441_v63 = vpop.f32.mrf.mxu3 }
 0x289   :  { %515 = vmatpush.msrb.mxu2 %v465_v41  ;;  %v498_v56 = vpop.f32.mrf.mxu1 }
 0x28b   :  { %516 = vmatpush.msrb.mxu2 %v441_v63 }
 0x28d   :  { %517 = vmatpush.msrb.mxu2 %v438_v50 }
 0x28f   :  { %518 = vmatpush.msrb.mxu2 %v435_v46 }
 0x291   :  { %519 = vmatpush.msrb.mxu2 %v432_v42  ;;  %v501_v0 = vpop.f32.mrf.mxu1 }
 0x293   :  { %520 = vmatpush.msrb.mxu2 %v408_v1 }
 0x295   :  { %521 = vmatpush.msrb.mxu2 %v405_v54 }
 0x297   :  { %522 = vmatpush.msrb.mxu2 %v402_v49 }
 0x299   :  { %523 = vmatpush.msrb.mxu2 %v399_v45  ;;  %v504_v2 = vpop.f32.mrf.mxu1 }
 0x29b   :  { %524 = vmatpush.msrb.mxu2 %v375_v51 }
 0x29d   :  { %525 = vmatpush.msrb.mxu2 %v372_v47 }
 0x29f   :  { %526 = vmatpush.msrb.mxu2 %v369_v43 }
 0x2a1   :  { %527 = vmatpush.msrb.mxu2 %v366_v40  ;;  %v507_v3 = vpop.f32.mrf.mxu1 }
 0x2a2   :  { %553 = vmatpush.msrb.mxu3 %v507_v3  ;;  %528 = vmatmul.f32.vlgmr.msrb.gmra.mxu2 %v857_v58  ;;  %v685_v58 = vld [vmem:[%s1009_s2 + $0x180] ss:$0 sm:$0xff] }
 0x2a4   :  { %554 = vmatpush.msrb.mxu3 %v504_v2 }
 0x2a6   :  { %555 = vmatpush.msrb.mxu3 %v501_v0 }
 0x2a8   :  { %556 = vmatpush.msrb.mxu3 %v498_v56 }
 0x2a9   :  { %676 = vmatmul.msk.f32.vlgmr.msrb.gmra.mxu3 %vm83_vm2, %v838_v53 }
 0x2aa   :  { %531 = vmatmul.f32.gmra.mxu2 %v870_v60 }
 0x2b1   :  { %677 = vmatmul.msk.f32.gmra.mxu3 %vm83_vm2, %v845_v55 }
 0x2b2   :  { %534 = vmatmul.f32.gmra.mxu2 %v878_v61 }
 0x2b9   :  { %678 = vmatmul.msk.f32.gmra.mxu3 %vm83_vm2, %v852_v57 }
 0x2ba   :  { %537 = vmatmul.f32.gmra.mxu2 %v884_v62 }
 0x2c1   :  { %679 = vmatmul.msk.f32.gmra.mxu3 %vm83_vm2, %v865_v59 }
 0x325   :  { %v529_v53 = vpop.f32.mrf.mxu2 }
 0x326   :  { %v530_v4 = vadd.f32 %v685_v58, %v529_v53 }
 0x32c   :  { %v558_v60 = vpop.f32.mrf.mxu3 }
 0x32d   :  { %v559_v5 = vadd.f32 %v558_v60, %v530_v4  ;;  %v532_v55 = vpop.f32.mrf.mxu2 }
 0x32e   :  { %v533_v6 = vadd.f32 %v685_v58, %v532_v55 }
 0x32f   :  { %v571_v61 = vsel %vm570_vm3, %v559_v5, -inf }
 0x330   :  { %572 = vmax.xlane.f32.xlu0 %v571_v61 }
 0x334   :  { %v561_v57 = vpop.f32.mrf.mxu3 }
 0x335   :  { %v562_v7 = vadd.f32 %v561_v57, %v533_v6  ;;  %v535_v62 = vpop.f32.mrf.mxu2 }
 0x336   :  { %v536_v59 = vadd.f32 %v685_v58, %v535_v62 }
 0x337   :  { %v574_v8 = vsel %vm570_vm3, %v562_v7, -inf }
 0x338   :  { %575 = vmax.xlane.f32.xlu0 %v574_v8 }
 0x33c   :  { %v564_v9 = vpop.f32.mrf.mxu3 }
 0x33d   :  { %v565_v10 = vadd.f32 %v564_v9, %v536_v59  ;;  %v538_v11 = vpop.f32.mrf.mxu2 }
 0x33e   :  { %v539_v13 = vadd.f32 %v685_v58, %v538_v11 }
 0x33f   :  { %v577_v12 = vsel %vm570_vm3, %v565_v10, -inf }
 0x340   :  { %578 = vmax.xlane.f32.xlu1 %v577_v12 }
 0x344   :  { %v567_v14 = vpop.f32.mrf.mxu3 }
 0x345   :  { %v568_v15 = vadd.f32 %v567_v14, %v539_v13 }
 0x347   :  { %v580_v16 = vsel %vm570_vm3, %v568_v15, -inf }
 0x348   :  { %581 = vmax.xlane.f32.xlu1 %v580_v16 }
 0x3a3   :  { %v573_v17 = vpop.xlane.xlu0 %572 }
 0x3a4   :  { %v583_v18 = vsub.f32 %v559_v5, %v573_v17 }
 0x3a6   :  { %v587_v19 = vmul.f32 1.442695, %v583_v18 }
 0x3a8   :  { %686 = vpow2.f32 %v587_v19 }
 0x3ab   :  { %v576_v20 = vpop.xlane.xlu0 %575 }
 0x3ac   :  { %v584_v21 = vsub.f32 %v562_v7, %v576_v20 }
 0x3ae   :  { %v687_v22 = vpop.eup %686  ;;  %v589_v23 = vmul.f32 1.442695, %v584_v21 }
 0x3af   :  { %v595_v24 = vsel %vm570_vm3, %v687_v22, 0.0 }
 0x3b0   :  { %688 = vpow2.f32 %v589_v23  ;;  %596 = vadd.xlane.f32.xlu2 %v595_v24 }
 0x3b3   :  { %v579_v25 = vpop.xlane.xlu1 %578 }
 0x3b4   :  { %v585_v26 = vsub.f32 %v565_v10, %v579_v25 }
 0x3b6   :  { %v689_v27 = vpop.eup %688  ;;  %v591_v28 = vmul.f32 1.442695, %v585_v26 }
 0x3b7   :  { %v598_v29 = vsel %vm570_vm3, %v689_v27, 0.0 }
 0x3b8   :  { %690 = vpow2.f32 %v591_v28  ;;  %599 = vadd.xlane.f32.xlu2 %v598_v29 }
 0x3bb   :  { %v582_v30 = vpop.xlane.xlu1 %581 }
 0x3bc   :  { %v586_v31 = vsub.f32 %v568_v15, %v582_v30 }
 0x3be   :  { %v691_v32 = vpop.eup %690  ;;  %v593_v33 = vmul.f32 1.442695, %v586_v31 }
 0x3bf   :  { %v601_v34 = vsel %vm570_vm3, %v691_v32, 0.0 }
 0x3c0   :  { %692 = vpow2.f32 %v593_v33  ;;  %602 = vadd.xlane.f32.xlu0 %v601_v34 }
 0x3c6   :  { %v693_v35 = vpop.eup %692 }
 0x3c7   :  { %v604_v36 = vsel %vm570_vm3, %v693_v35, 0.0 }
 0x3c8   :  { %605 = vadd.xlane.f32.xlu1 %v604_v36 }
 0x423   :  { %v597_v37 = vpop.xlane.xlu2 %596 }
 0x424   :  { %694 = vlog2.f32 %v597_v37 }
 0x42a   :  { %v695_v38 = vpop.eup %694 }
 0x42b   :  { %v608_v39 = vmul.f32 0.6931472, %v695_v38  ;;  %v600_v40 = vpop.xlane.xlu2 %599 }
 0x42c   :  { %696 = vlog2.f32 %v600_v40 }
 0x42d   :  { %v615_v41 = vsub.f32 %v583_v18, %v608_v39 }
 0x42f   :  { %619 = vst.msk [vmem:[%s1012_s3] sm:$0xff] %vm570_vm3, %v615_v41 }
 0x432   :  { %v697_v42 = vpop.eup %696 }
 0x433   :  { %v610_v43 = vmul.f32 0.6931472, %v697_v42  ;;  %v603_v44 = vpop.xlane.xlu0 %602 }
 0x434   :  { %698 = vlog2.f32 %v603_v44 }
 0x435   :  { %v616_v45 = vsub.f32 %v584_v21, %v610_v43 }
 0x437   :  { %620 = vst.msk [vmem:[%s1012_s3 + $0x8] sm:$0xff] %vm570_vm3, %v616_v45 }
 0x43a   :  { %v699_v46 = vpop.eup %698 }
 0x43b   :  { %v612_v47 = vmul.f32 0.6931472, %v699_v46  ;;  %v606_v48 = vpop.xlane.xlu1 %605 }
 0x43c   :  { %700 = vlog2.f32 %v606_v48 }
 0x43d   :  { %v617_v49 = vsub.f32 %v585_v26, %v612_v47 }
 0x43f   :  { %621 = vst.msk [vmem:[%s1012_s3 + $0x10] sm:$0xff] %vm570_vm3, %v617_v49 }
 0x442   :  { %v701_v50 = vpop.eup %700 }
 0x443   :  { %v614_v51 = vmul.f32 0.6931472, %v701_v50 }
 0x445   :  { %v618_v52 = vsub.f32 %v586_v31, %v614_v51 }
 0x447   :  { %622 = vst.msk [vmem:[%s1012_s3 + $0x18] sm:$0xff] %vm570_vm3, %v618_v52 }

</bundles_post_ra>
